<compile_context>
chip_gen: v6e
topology: v6e:2x2x1
jax: 0.10.0
libtpu: 0.0.40
codegen_flags: <defaults>
</compile_context>

<pallas_src>
import functools

import jax
import jax.numpy as jnp
from jax.experimental import pallas as pl
from jax.experimental.pallas import tpu as pltpu


def _round_up(x, m):
    return ((x + m - 1) // m) * m


def _affinity_loss_kernel(lam_ref, yp_ref, yt_ref, out_ref, *,
                          batch, block_b, needs_mask):
    lam = lam_ref[0, 0]                                   # SMEM f32 scalar

    # Native-dtype DMA, in-register upcast to f32 (all math in f32).
    yp = yp_ref[...].astype(jnp.float32)                  # (TB, C+1)
    yt = yt_ref[...].astype(jnp.float32)                  # (TB, C+1)

    onehot = yt[:, :-1]                                   # (TB, C)
    distance = yp[:, :-1]                                 # (TB, C)
    rw_col = yp[:, -1:]                                   # (TB, 1) last col of y_pred

    d_fi_wyi = jnp.sum(onehot * distance, axis=-1, keepdims=True)        # (TB, 1)
    losses = jnp.maximum(lam + distance - d_fi_wyi, 0.0)                 # (TB, C)
    l_mm_raw = jnp.sum(losses * (1.0 - onehot), axis=-1, keepdims=True)  # (TB, 1)

    # Per-row contribution: L_mm[i] (already /B) + y_pred[i, -1].
    per_row = l_mm_raw * (1.0 / batch) + rw_col                          # (TB, 1)

    if needs_mask:
        # Only emitted when grid_b * TB > B: rows past the batch end hold
        # unspecified data (ragged boundary block) or zero padding, so mask
        # with where (NaN-safe; 0 * garbage would not be).
        row = (pl.program_id(0) * block_b
               + jax.lax.broadcasted_iota(jnp.int32, (block_b, 1), 0))
        per_row = jnp.where(row < batch, per_row, 0.0)

    tile_sum = jnp.sum(per_row)
    # Lane-dense (1, 8, 128) partial-sum block, distinct per grid step so the
    # batch axis is soundly "parallel" (megacore on v7x).  Wrapper reads [0,0].
    out_ref[...] = jnp.full(out_ref.shape, tile_sum, dtype=out_ref.dtype)


def affinity_loss(y_pred_plusone, y_true_plusone, lambd, *, block_b=65536):
    """Pallas implementation of Affinity_Loss(lambd).forward(y_pred, y_true)."""
    B, Cp1 = y_pred_plusone.shape
    assert y_true_plusone.shape == (B, Cp1)
    assert Cp1 >= 2

    itp = jnp.dtype(y_pred_plusone.dtype).itemsize
    itt = jnp.dtype(y_true_plusone.dtype).itemsize
    # Sublane packing requirement of the narrowest input dtype (f32:8, bf16:16, i8:32).
    sublane = max(8, 32 // itp, 32 // itt)

    # VMEM budget for the double-buffered input tiles (2 buffers per input),
    # kept well under the smallest (v7x) scoped-VMEM budget.
    vmem_budget = 24 * 1024 * 1024
    per_row_bytes = 2 * Cp1 * (itp + itt)
    cap = max(sublane, vmem_budget // per_row_bytes)

    tb = min(int(block_b), cap)
    tb = max(sublane, (tb // sublane) * sublane)

    yp, yt = y_pred_plusone, y_true_plusone
    if B < tb:
        # Batch smaller than one tile: shrink the tile to the batch and pad by
        # at most (sublane - 1) rows (negligible; masked out in-kernel).
        tb = _round_up(B, sublane)
        pad = tb - B
        if pad:
            yp = jnp.pad(yp, ((0, pad), (0, 0)))
            yt = jnp.pad(yt, ((0, pad), (0, 0)))
        grid_b = 1
    else:
        # No wrapper padding for large B: cdiv grid with a ragged last block.
        grid_b = pl.cdiv(B, tb)

    needs_mask = (grid_b * tb) != B

    # lambd as a runtime SMEM scalar -> no recompile per lambda value.
    lam_arr = jnp.asarray(lambd, dtype=jnp.float32).reshape(1, 1)

    kernel = functools.partial(
        _affinity_loss_kernel, batch=B, block_b=tb, needs_mask=needs_mask)

    partials = pl.pallas_call(
        kernel,
        out_shape=jax.ShapeDtypeStruct((grid_b, 8, 128), jnp.float32),
        grid=(grid_b,),
        in_specs=[
            pl.BlockSpec(memory_space=pltpu.MemorySpace.SMEM),   # lambd (1,1)
            pl.BlockSpec((tb, Cp1), lambda i: (i, 0)),
            pl.BlockSpec((tb, Cp1), lambda i: (i, 0)),
        ],
        out_specs=pl.BlockSpec((1, 8, 128), lambda i: (i, 0, 0)),
        compiler_params=pltpu.CompilerParams(
            dimension_semantics=("parallel",),
            vmem_limit_bytes=32 * 1024 * 1024),
    )(lam_arr, yp, yt)

    return jnp.sum(partials[:, 0, 0])


def affinity_loss_reference(y_pred_plusone, y_true_plusone, lambd):
    onehot = y_true_plusone[:, :-1]
    distance = y_pred_plusone[:, :-1]
    rw = jnp.mean(y_pred_plusone[:, -1])
    d_fi_wyi = jnp.sum(onehot * distance, axis=-1, keepdims=True)
    losses = jnp.maximum(lambd + distance - d_fi_wyi, 0.0)
    l_mm = jnp.sum(losses * (1.0 - onehot), axis=-1) / y_true_plusone.shape[0]
    return jnp.sum(l_mm + rw, axis=-1)


if __name__ == "__main__":
    # Small shapes consistent with the module: 10 classes + 1 extra column.
    C = 10
    lambd = 0.5

    key = jax.random.PRNGKey(0)
    k_pred1, k_lbl1, k_pred2, k_lbl2 = jax.random.split(key, 4)

    def make_inputs(k_pred, k_lbl, b, c):
        y_pred = jax.random.normal(k_pred, (b, c + 1), dtype=jnp.float32)
        labels = jax.random.randint(k_lbl, (b,), 0, c)
        onehot = jax.nn.one_hot(labels, c, dtype=jnp.float32)
        y_true = jnp.concatenate([onehot, jnp.ones((b, 1), jnp.float32)], axis=-1)
        return y_pred, y_true

    # Case 1: B smaller than one tile -> single tile, tiny pad + row mask.
    yp1, yt1 = make_inputs(k_pred1, k_lbl1, 10, C)
    loss1 = jax.block_until_ready(affinity_loss(yp1, yt1, lambd))
    ref1 = affinity_loss_reference(yp1, yt1, lambd)
    assert loss1.shape == ()
    assert jnp.allclose(loss1, ref1, atol=1e-5, rtol=1e-5), (loss1, ref1)

    # Case 2: multi-tile cdiv grid with a ragged (masked) last block.
    yp2, yt2 = make_inputs(k_pred2, k_lbl2, 20, C)
    loss2 = jax.block_until_ready(affinity_loss(yp2, yt2, lambd, block_b=8))
    ref2 = affinity_loss_reference(yp2, yt2, lambd)
    assert jnp.allclose(loss2, ref2, atol=1e-5, rtol=1e-5), (loss2, ref2)

    print("KERNEL_OK")
</pallas_src>

<mosaic_0001>
module attributes {stable_mosaic.version = 11 : i64} {
  func.func @_affinity_loss_kernel(%arg0: i32, %arg1: memref<1x1xf32, #tpu.memory_space<smem>>, %arg2: memref<16x11xf32, #tpu.memory_space<vmem>>, %arg3: memref<16x11xf32, #tpu.memory_space<vmem>>, %arg4: memref<1x8x128xf32, #tpu.memory_space<vmem>>) attributes {dimension_semantics = [#tpu.dimension_semantics<parallel>], iteration_bounds = array<i64: 1>, scalar_prefetch = 0 : i64, scratch_operands = 0 : i64, tpu.core_type = #tpu.core_type<tc>, window_params = [{transform_indices = @transform_0, window_bounds = array<i64: 1, 1>}, {transform_indices = @transform_1, window_bounds = array<i64: 16, 11>}, {transform_indices = @transform_2, window_bounds = array<i64: 16, 11>}, {transform_indices = @transform_3, window_bounds = array<i64: 1, 8, 128>}]} {
    %c0 = arith.constant 0 : index
    %c0_0 = arith.constant 0 : index
    %0 = memref.load %arg1[%c0, %c0_0] : memref<1x1xf32, #tpu.memory_space<smem>>
    %c0_1 = arith.constant 0 : index
    %c0_2 = arith.constant 0 : index
    %1 = vector.load %arg2[%c0_1, %c0_2] : memref<16x11xf32, #tpu.memory_space<vmem>>, vector<16x11xf32>
    %c0_3 = arith.constant 0 : index
    %c0_4 = arith.constant 0 : index
    %2 = vector.load %arg3[%c0_3, %c0_4] : memref<16x11xf32, #tpu.memory_space<vmem>>, vector<16x11xf32>
    %3 = vector.extract_strided_slice %2 {offsets = [0, 0], sizes = [16, 10], strides = [1, 1]} : vector<16x11xf32> to vector<16x10xf32>
    %4 = vector.extract_strided_slice %1 {offsets = [0, 0], sizes = [16, 10], strides = [1, 1]} : vector<16x11xf32> to vector<16x10xf32>
    %5 = vector.extract_strided_slice %1 {offsets = [0, 10], sizes = [16, 1], strides = [1, 1]} : vector<16x11xf32> to vector<16x1xf32>
    %6 = arith.mulf %3, %4 : vector<16x10xf32>
    %cst = arith.constant dense<0.000000e+00> : vector<16xf32>
    %7 = vector.multi_reduction <add>, %6, %cst [1] : vector<16x10xf32> to vector<16xf32>
    %8 = vector.shape_cast %7 : vector<16xf32> to vector<16x1xf32>
    %9 = vector.broadcast %0 : f32 to vector<16x10xf32>
    %10 = arith.addf %9, %4 : vector<16x10xf32>
    %11 = vector.broadcast %8 : vector<16x1xf32> to vector<16x10xf32>
    %12 = arith.subf %10, %11 : vector<16x10xf32>
    %cst_5 = arith.constant 0.000000e+00 : f32
    %13 = vector.broadcast %cst_5 : f32 to vector<16x10xf32>
    %14 = arith.maximumf %12, %13 : vector<16x10xf32>
    %cst_6 = arith.constant 1.000000e+00 : f32
    %15 = vector.broadcast %cst_6 : f32 to vector<16x10xf32>
    %16 = arith.subf %15, %3 : vector<16x10xf32>
    %17 = arith.mulf %14, %16 : vector<16x10xf32>
    %cst_7 = arith.constant dense<0.000000e+00> : vector<16xf32>
    %18 = vector.multi_reduction <add>, %17, %cst_7 [1] : vector<16x10xf32> to vector<16xf32>
    %19 = vector.shape_cast %18 : vector<16xf32> to vector<16x1xf32>
    %cst_8 = arith.constant 1.000000e-01 : f32
    %20 = vector.broadcast %cst_8 : f32 to vector<16x1xf32>
    %21 = arith.mulf %19, %20 : vector<16x1xf32>
    %22 = arith.addf %21, %5 : vector<16x1xf32>
    %c16_i32 = arith.constant 16 : i32
    %23 = arith.muli %arg0, %c16_i32 : i32
    %24 = tpu.iota {dimensions = array<i32: 0>} : vector<16x1xi32>
    %25 = vector.broadcast %23 : i32 to vector<16x1xi32>
    %26 = arith.addi %25, %24 : vector<16x1xi32>
    %c10_i32 = arith.constant 10 : i32
    %27 = vector.broadcast %c10_i32 : i32 to vector<16x1xi32>
    %28 = arith.cmpi slt, %26, %27 : vector<16x1xi32>
    %cst_9 = arith.constant 0.000000e+00 : f32
    %29 = vector.broadcast %cst_9 : f32 to vector<16x1xf32>
    %30 = arith.select %28, %22, %29 : vector<16x1xi1>, vector<16x1xf32>
    %31 = vector.shape_cast %30 : vector<16x1xf32> to vector<1x16x1xf32>
    %cst_10 = arith.constant dense<0.000000e+00> : vector<1xf32>
    %32 = vector.multi_reduction <add>, %31, %cst_10 [1, 2] : vector<1x16x1xf32> to vector<1xf32>
    %33 = vector.shape_cast %32 : vector<1xf32> to vector<1x1x1xf32>
    %34 = vector.extract %33[0, 0, 0] : f32 from vector<1x1x1xf32>
    %35 = vector.broadcast %34 : f32 to vector<1x8x128xf32>
    %c0_11 = arith.constant 0 : index
    %c0_12 = arith.constant 0 : index
    %c0_13 = arith.constant 0 : index
    %36 = vector.load %arg4[%c0_11, %c0_12, %c0_13] : memref<1x8x128xf32, #tpu.memory_space<vmem>>, vector<1x8x128xf32>
    tpu.vector_store %arg4[%c0_11, %c0_12, %c0_13], %35 {strides = array<i32>} : memref<1x8x128xf32, #tpu.memory_space<vmem>>, vector<1x8x128xf32>,
    return
  }
  func.func @transform_0(%arg0: i32) -> (i32, i32) {
    %c0_i32 = arith.constant 0 : i32
    %c0_i32_0 = arith.constant 0 : i32
    %c0_i32_1 = arith.constant 0 : i32
    return %c0_i32, %c0_i32_0 : i32, i32
  }
  func.func @transform_1(%arg0: i32) -> (i32, i32) {
    %c0_i32 = arith.constant 0 : i32
    %c0_i32_0 = arith.constant 0 : i32
    return %arg0, %c0_i32 : i32, i32
  }
  func.func @transform_2(%arg0: i32) -> (i32, i32) {
    %c0_i32 = arith.constant 0 : i32
    %c0_i32_0 = arith.constant 0 : i32
    return %arg0, %c0_i32 : i32, i32
  }
  func.func @transform_3(%arg0: i32) -> (i32, i32, i32) {
    %c0_i32 = arith.constant 0 : i32
    %c0_i32_0 = arith.constant 0 : i32
    %c0_i32_1 = arith.constant 0 : i32
    return %arg0, %c0_i32, %c0_i32_0 : i32, i32, i32
  }
}

</mosaic_0001>

<bundles_post_ra>
// kernel: tpu_custom_call.1
= control target key start
LH: loop header
LB: loop body
LE: loop exit
PB: predicated region body
PF: predicated region fallthrough
CT: control target
= control target key end

     0   :  { %9 = vsyncpa [#allocation4], 0  ;;  %s245_s0 = inlined_call_operand.<no memory space> [shape: f32[1,1], index: 0, kind: input, shape index: {}]   ;;  %s246_s1 = inlined_call_operand.hbm [shape: f32[16,11], index: 1, kind: input, shape index: {}]   ;;  %s247_s2 = inlined_call_operand.hbm [shape: f32[16,11], index: 2, kind: input, shape index: {}]   ;;  %s248_s3 = inlined_call_operand.hbm [shape: f32[1,8,128], index: 3, kind: output, shape index: {}]  }
   0x1   :  { %10 = vsyncpa [#allocation7], 0 }
   0x2   :  { %11 = vsyncpa [#allocation5], 0  ;;  %s203_s12 = smov [#allocation3]  }
   0x3   :  { %s19_s13 = sshll.u32 %s203_s12, 4  ;;  %s20_s13 = int_to_ptr.vmem [resolvable:$true] %s19_s13 }
   0x4   :  { %s145_s14 = scalar_lea.vmem %s20_s13, 256  ;;  %p150_p1 = scmp.lt.s32.totalorder %s20_s13, %s20_s13 }
   0x5   :  { %p146_p0 = scmp.ne.s32.totalorder %s20_s13, %s145_s14  ;;  %p151_p2 = scmp.lt.s32.totalorder %s145_s14, %s145_s14 }
   0x7   :  { %p152_p3 = por %p151_p2, %p150_p1 }
   0x9   :  { %p153_p4 = pnand %p152_p3, %p146_p0 }
   0xb   :  { %156 = shalt.err (!%p153_p4)
}
   0xc   :  { %s204_s15 = smov 128   ;;  %s205_s16 = smov 8  }
   0xd   :  { %25 = dma.hbm_to_vmem [thread:$0]  %s246_s1, 256, %s20_s13, [#allocation4], %s204_s15, %s204_s15, %s205_s16  }
   0xe   :  { %s206_s19 = smov [#allocation6]  }
   0xf   :  { %s31_s20 = sshll.u32 %s206_s19, 4  ;;  %s32_s20 = int_to_ptr.vmem [resolvable:$true] %s31_s20 }
  0x10   :  { %s165_s21 = scalar_lea.vmem %s32_s20, 256  ;;  %p170_p6 = scmp.lt.s32.totalorder %s32_s20, %s32_s20 }
  0x11   :  { %p166_p5 = scmp.ne.s32.totalorder %s32_s20, %s165_s21  ;;  %p171_p7 = scmp.lt.s32.totalorder %s165_s21, %s165_s21 }
  0x13   :  { %p172_p8 = por %p171_p7, %p170_p6 }
  0x15   :  { %p173_p9 = pnand %p172_p8, %p166_p5 }
  0x17   :  { %176 = shalt.err (!%p173_p9)
}
  0x18   :  { %37 = dma.hbm_to_vmem [thread:$0]  %s247_s2, 256, %s32_s20, [#allocation7], %s204_s15, %s204_s15, %s205_s16  }
  0x19   :  { %197 = dma.done.wait [#allocation4], 256  }
  0x1a   :  { %198 = vsyncadd [#allocation4], 4294967040 }
  0x1b   :  { %199 = dma.done.wait [#allocation7], 256  }
  0x1c   :  { %200 = vsyncadd [#allocation7], 4294967040  ;;  %v46_v0 = vld [vmem:[#allocation3 + $0x8] sm:$0xff]  ;;  %v48_v1 = vld [vmem:[#allocation6 + $0x8] sm:$0xff]  ;;  %vm51_vm0 = vcmask 80896   ;;  %v58_v8 = vstv %s245_s0  ;;  %v80_v23 = vlaneseq  ;;  %s207_s0 = smov 118  }
  0x1d   :  { %v45_v2 = vld [vmem:[#allocation3] sm:$0xff]  ;;  %v50_v3 = vmul.f32 %v48_v1, %v46_v0  ;;  %v47_v4 = vld [vmem:[#allocation6] sm:$0xff]  ;;  %v60_v9 = vadd.f32 %v58_v8, %v46_v0  ;;  %v66_v13 = vsub.f32 1.0, %v48_v1  ;;  %vm98_vm2 = vcmask 7168   ;;  %s208_s2 = smov [#allocation8]  }
  0x1e   :  { %v49_v5 = vmul.f32 %v47_v4, %v45_v2  ;;  %v59_v12 = vadd.f32 %v58_v8, %v45_v2  ;;  %v65_v18 = vsub.f32 1.0, %v47_v4  ;;  %v81_v24 = vshrl.u32 %v80_v23, 7  ;;  %s119_s25 = sshll.u32 %s208_s2, 4  ;;  %s120_s25 = int_to_ptr.vmem [resolvable:$true] %s119_s25 }
  0x1f   :  { %v55_v6 = vsel %vm51_vm0, %v50_v3, 0.0  ;;  %s177_s27 = scalar_lea.vmem %s120_s25, 128  ;;  %p182_p11 = scmp.lt.s32.totalorder %s120_s25, %s120_s25 }
  0x20   :  { %56 = vadd.xlane.f32.xlu0 %v55_v6  ;;  %v52_v7 = vsel %vm51_vm0, %v49_v5, 0.0  ;;  %v82_v25 = vadd.s32 8, %v81_v24  ;;  %p178_p10 = scmp.ne.s32.totalorder %s120_s25, %s177_s27  ;;  %p183_p12 = scmp.lt.s32.totalorder %s177_s27, %s177_s27 }
  0x22   :  { %vm87_vm1 = vcmp.lt.s32.totalorder %v82_v25, 10  ;;  %p184_p13 = por %p183_p12, %p182_p11 }
  0x24   :  { %53 = vadd.xlane.f32.xlu0 %v52_v7  ;;  %p185_p0 = pnand %p184_p13, %p178_p10 }
  0xa9   :  { %v57_v10 = vpop.xlane.xlu0 %56 }
  0xaa   :  { %v62_v11 = vsub.f32 %v60_v9, %v57_v10 }
  0xac   :  { %v64_v14 = vmax.f32 %v62_v11, 0.0 }
  0xad   :  { %v54_v15 = vpop.xlane.xlu0 %53 }
  0xae   :  { %v61_v16 = vsub.f32 %v59_v12, %v54_v15  ;;  %v68_v17 = vmul.f32 %v66_v13, %v64_v14 }
  0xb0   :  { %v63_v19 = vmax.f32 %v61_v16, 0.0  ;;  %v72_v20 = vsel %vm51_vm0, %v68_v17, 0.0 }
  0xb1   :  { %73 = vadd.xlane.f32.xlu1 %v72_v20 }
  0xb2   :  { %v67_v21 = vmul.f32 %v65_v18, %v63_v19 }
  0xb4   :  { %v69_v22 = vsel %vm51_vm0, %v67_v21, 0.0 }
  0xb5   :  { %70 = vadd.xlane.f32.xlu1 %v69_v22 }
 0x13a   :  { %v74_v26 = vpop.xlane.xlu1 %73 }
 0x13b   :  { %v76_v27 = vmul.f32 0.1, %v74_v26 }
 0x13d   :  { %v78_v28 = vadd.f32 %v76_v27, %v46_v0 }
 0x13e   :  { %v71_v29 = vpop.xlane.xlu1 %70 }
 0x13f   :  { %v75_v30 = vmul.f32 0.1, %v71_v29  ;;  %v89_v31 = vsel %vm87_vm1, %v78_v28, 0.0 }
 0x140   :  { %94 = vrot.lane.b32.xlu1 %v89_v31, %s207_s0 }
 0x141   :  { %v77_v32 = vadd.f32 %v75_v30, %v45_v2 }
 0x143   :  { %92 = vrot.lane.b32.xlu0 %v77_v32, %s207_s0 }
 0x1b2   :  { %v95_v33 = vpop.permute.xlu1 %94 }
 0x1b3   :  { %v100_v35 = vsel %vm98_vm2, %v95_v33, 0.0 }
 0x1b5   :  { %v93_v34 = vpop.permute.xlu0 %92 }
 0x1b6   :  { %v99_v36 = vsel %vm98_vm2, %v93_v34, 0.0 }
 0x1b7   :  { %v101_v37 = vadd.f32 %v100_v35, %v99_v36 }
 0x1b9   :  { %102 = vadd.xlane.f32.xlu1 %v101_v37 }
 0x242   :  { %v103_v38 = vpop.xlane.xlu1 %102 }
 0x243   :  { %v104_v39 = vrot.slane %v103_v38, 4 }
 0x245   :  { %v105_v40 = vadd.f32 %v104_v39, %v103_v38 }
 0x247   :  { %v106_v41 = vrot.slane %v105_v40, 2 }
 0x249   :  { %v107_v42 = vadd.f32 %v106_v41, %v105_v40 }
 0x24b   :  { %v108_v43 = vrot.slane %v107_v42, 1 }
 0x24d   :  { %v109_v44 = vadd.f32 %v108_v43, %v107_v42 }
 0x24f   :  { %129 = vpush %v109_v44 }
 0x280   :  { %s130_s26 = spop %129 }
 0x281   :  { %v111_v45 = vstv %s130_s26 }
 0x282   :  { %112 = vst [vmem:[#allocation8] sm:$0xff] %v111_v45 }
 0x283   :  { %188 = shalt.err (!%p185_p0)
}
 0x284   :  { %122 = dma.vmem_to_hbm [thread:$0]  %s120_s25, 128, %s248_s3, [#allocation5]  }
 0x285   :  { %201 = dma.done.wait [#allocation5], 128  }
 0x286   :  { %202 = vsyncadd [#allocation5], 4294967168 }
 0x287   :  { %126 = vsyncpa [#allocation4], 1 }
 0x288   :  { %127 = vsyncpa [#allocation7], 1 }
 0x289   :  { %128 = vsyncpa [#allocation5], 1 }

</bundles_post_ra>
